<compile_context>
chip_gen: v5e
topology: v5e:2x2
jax: 0.10.0
libtpu: 0.0.40
codegen_flags: <defaults>
</compile_context>

<pallas_src>
import functools

import jax
import jax.numpy as jnp
from jax import lax
from jax.experimental import pallas as pl
from jax.experimental.pallas import tpu as pltpu


def _cdiv(a: int, b: int) -> int:
    return -(-a // b)


def _round_up(x: int, m: int) -> int:
    return _cdiv(x, m) * m


def _dot_nt(x, w):
    # x: (tm, tk), w: (tn, tk)  ->  (tm, tn) == x @ w.T  (contract shared K).
    # Default precision = bf16 multiplies + f32 accumulation (MXU-native on
    # v5e/v6e/v7x).  Use precision=lax.Precision.HIGHEST for true f32 (~3x MXU).
    return lax.dot_general(
        x,
        w,
        dimension_numbers=(((1,), (1,)), ((), ())),
        preferred_element_type=jnp.float32,
    )


def _kernel_single_k(x_ref, w_ref, o_ref):
    # Whole K in one tile: write the result directly, no accumulator.
    o_ref[...] = _dot_nt(x_ref[...], w_ref[...]).astype(o_ref.dtype)


def _kernel_acc_inplace(x_ref, w_ref, o_ref):
    # f32 output: the output block is resident across the K axis (its index_map
    # ignores kk), so accumulate straight into it — no scratch buffer.
    @pl.when(pl.program_id(2) == 0)
    def _():
        o_ref[...] = jnp.zeros_like(o_ref)

    o_ref[...] += _dot_nt(x_ref[...], w_ref[...])


def _kernel_acc_scratch(x_ref, w_ref, o_ref, acc_ref):
    # Non-f32 output: accumulate in f32 scratch, cast once at the end.
    @pl.when(pl.program_id(2) == 0)
    def _():
        acc_ref[...] = jnp.zeros_like(acc_ref)

    acc_ref[...] += _dot_nt(x_ref[...], w_ref[...])

    @pl.when(pl.program_id(2) == pl.num_programs(2) - 1)
    def _():
        o_ref[...] = acc_ref[...].astype(o_ref.dtype)


@functools.lru_cache(maxsize=1)
def _vmem_capacity_bytes() -> int:
    cap = 64 * 1024 * 1024  # conservative default: v7x per-TensorCore VMEM
    try:
        info = pltpu.get_tpu_info()
        cap = int(getattr(info, "vmem_capacity_bytes", cap)) or cap
    except Exception:
        pass
    return cap


def _tile_presets():
    """(TM, TN, TK, vmem_limit_bytes) chosen from the chip's VMEM size."""
    if _vmem_capacity_bytes() >= 96 * 1024 * 1024:
        # v5e / v6e: 128 MiB VMEM — big blocks track the HBM roofline better.
        return 1024, 1024, 1024, 64 * 1024 * 1024
    # v7x: 64 MiB VMEM per TensorCore — keep the double-buffered set small.
    return 1024, 512, 512, 40 * 1024 * 1024


def _pick_tk(k: int, tk_max: int):
    """Choose the K tile.  Returns (tk, k_pad).  Only K ever gets zero-padded,
    because garbage in the K tail would corrupt real output values."""
    if k <= tk_max:
        return k, k  # one full-extent K block: no padding, no (8,128) issue
    cap = (tk_max // 128) * 128
    for t in range(cap, 127, -128):  # largest 128-multiple dividing K exactly
        if k % t == 0:
            return t, k
    k_pad = _round_up(k, 128)  # minimal pad, then tile the padded K
    for t in range(cap, 127, -128):
        if k_pad % t == 0:
            return t, k_pad
    return 128, k_pad


@jax.jit
def trace_linear(x: jax.Array, weight: jax.Array) -> jax.Array:
    """y = x @ weight.T, matching torch.nn.Linear(bias=False).

    x:      (..., in_features)
    weight: (out_features, in_features)  — PyTorch layout, never transposed here.
    returns (..., out_features)
    """
    *lead, k = x.shape
    n, k_w = weight.shape
    assert k == k_w, "in_features mismatch"

    m = 1
    for d in lead:
        m *= d
    x2d = x.reshape(m, k)
    out_dtype = x.dtype

    # --- tiny-problem fast path: whole problem in one block, no grid. ---
    if m <= 256 and n <= 1024 and k <= 1024:
        out2d = pl.pallas_call(
            _kernel_single_k,
            out_shape=jax.ShapeDtypeStruct((m, n), out_dtype),
        )(x2d, weight)
        return out2d.reshape(*lead, n)

    tm_max, tn_max, tk_max, vmem_limit = _tile_presets()

    tm = min(tm_max, _round_up(m, 128))
    tn = min(tn_max, _round_up(n, 128))
    mt, nt = _cdiv(m, tm), _cdiv(n, tn)

    # Megacore (v7x has 2 TensorCores): make sure there are >= 2 parallel
    # blocks so the second core is not idle.
    if mt * nt < 2:
        if n >= 256:
            tn = _round_up(_cdiv(n, 2), 128)
            nt = _cdiv(n, tn)
        elif m >= 256:
            tm = _round_up(_cdiv(m, 2), 128)
            mt = _cdiv(m, tm)

    tk, k_pad = _pick_tk(k, tk_max)
    w = weight
    if k_pad != k:  # K tail must be exact zeros (it contributes to real outputs)
        x2d = jnp.pad(x2d, ((0, 0), (0, k_pad - k)))
        w = jnp.pad(weight, ((0, 0), (0, k_pad - k)))
    kt = k_pad // tk

    if kt == 1:
        # K fits in one tile: 2-D grid, no accumulator at all.
        grid_spec = pltpu.PrefetchScalarGridSpec(
            num_scalar_prefetch=0,
            grid=(mt, nt),
            in_specs=[
                pl.BlockSpec((tm, tk), lambda i, j: (i, 0)),
                pl.BlockSpec((tn, tk), lambda i, j: (j, 0)),  # weight stays (N, K)
            ],
            out_specs=pl.BlockSpec((tm, tn), lambda i, j: (i, j)),
        )
        kernel = _kernel_acc_scratch  # placeholder, overwritten below
        kernel = _kernel_single_k
        dim_sem = ("parallel", "parallel")
    else:
        in_specs = [
            pl.BlockSpec((tm, tk), lambda i, j, kk: (i, kk)),
            # TODO(synk): if profiling shows the weight DMA exposed, add
            # pipeline_mode=pl.Buffered(3) on this spec (measure first).
            pl.BlockSpec((tn, tk), lambda i, j, kk: (j, kk)),  # weight stays (N, K)
        ]
        out_spec = pl.BlockSpec((tm, tn), lambda i, j, kk: (i, j))
        if out_dtype == jnp.float32:
            kernel = _kernel_acc_inplace
            scratch = []
        else:
            kernel = _kernel_acc_scratch
            scratch = [pltpu.VMEM((tm, tn), jnp.float32)]
        grid_spec = pltpu.PrefetchScalarGridSpec(
            num_scalar_prefetch=0,
            grid=(mt, nt, kt),
            in_specs=in_specs,
            out_specs=out_spec,
            scratch_shapes=scratch,
        )
        dim_sem = ("parallel", "parallel", "arbitrary")

    out2d = pl.pallas_call(
        kernel,
        out_shape=jax.ShapeDtypeStruct((m, n), out_dtype),
        grid_spec=grid_spec,
        compiler_params=pltpu.CompilerParams(
            dimension_semantics=dim_sem,
            vmem_limit_bytes=vmem_limit,
        ),
    )(x2d, w)

    return out2d.reshape(*lead, n)


if __name__ == "__main__":
    # TODO(synk): ComponentId / TraceCtx op-graph registration is trace
    # bookkeeping with no math; only the matmul forward is implemented here.
    key = jax.random.PRNGKey(0)

    def make_inputs(k, batch, seq, in_features, out_features):
        kx, kw = jax.random.split(k)
        x = jax.random.normal(kx, (batch, seq, in_features), dtype=jnp.float32)
        bound = 1.0 / (in_features ** 0.5)
        w = jax.random.uniform(
            kw, (out_features, in_features), dtype=jnp.float32,
            minval=-bound, maxval=bound,
        )
        return x, w

    cases = [
        (2, 8, 32, 64),        # tiny (module-implied shapes): single-block fast path
        (2, 200, 1000, 1920),  # tiled: cdiv edge blocks on M/N (+ K pad on small-tk chips)
        (2, 256, 2304, 512),   # tiled: kt > 1 in-place f32 accumulation + megacore N split
    ]
    for idx, (b, s, ki, ko) in enumerate(cases):
        key, sub = jax.random.split(key)
        x, w = make_inputs(sub, b, s, ki, ko)
        y = trace_linear(x, w)
        jax.block_until_ready(y)
        y_ref = jnp.einsum("bsi,oi->bso", x, w)
        assert y.shape == (b, s, ko), f"bad shape in case {idx}: {y.shape}"
        assert jnp.allclose(y, y_ref, atol=2e-2, rtol=2e-2), f"mismatch vs reference in case {idx}"

    print("KERNEL_OK")
</pallas_src>

<mosaic_0001>
module attributes {stable_mosaic.version = 11 : i64} {
  func.func @_kernel_single_k(%arg0: memref<16x32xf32, #tpu.memory_space<vmem>>, %arg1: memref<64x32xf32, #tpu.memory_space<vmem>>, %arg2: memref<16x64xf32, #tpu.memory_space<vmem>>) attributes {dimension_semantics = [], scalar_prefetch = 0 : i64, scratch_operands = 0 : i64, tpu.core_type = #tpu.core_type<tc>} {
    %c0 = arith.constant 0 : index
    %c0_0 = arith.constant 0 : index
    %0 = vector.load %arg0[%c0, %c0_0] : memref<16x32xf32, #tpu.memory_space<vmem>>, vector<16x32xf32>
    %c0_1 = arith.constant 0 : index
    %c0_2 = arith.constant 0 : index
    %1 = vector.load %arg1[%c0_1, %c0_2] : memref<64x32xf32, #tpu.memory_space<vmem>>, vector<64x32xf32>
    %cst = arith.constant dense<0.000000e+00> : vector<16x64xf32>
    %2 = tpu.matmul %0, %1, %cst {dimension_numbers = #tpu.dot_dimension_numbers<[1], [1], [0], [0], [0, 0, 1, 0], [], []>} : vector<16x32xf32>, vector<64x32xf32>, vector<16x64xf32> -> vector<16x64xf32>
    %c0_3 = arith.constant 0 : index
    %c0_4 = arith.constant 0 : index
    %3 = vector.load %arg2[%c0_3, %c0_4] : memref<16x64xf32, #tpu.memory_space<vmem>>, vector<16x64xf32>
    tpu.vector_store %arg2[%c0_3, %c0_4], %2 {strides = array<i32>} : memref<16x64xf32, #tpu.memory_space<vmem>>, vector<16x64xf32>,
    return
  }
}

</mosaic_0001>

<bundles_post_ra>
// kernel: trace_linear.1
= control target key start
LH: loop header
LB: loop body
LE: loop exit
PB: predicated region body
PF: predicated region fallthrough
CT: control target
= control target key end

     0   :  { %vm22_vm0 = vcmask 261120   ;;  %s213_s0 = inlined_call_operand.vmem [shape: f32[16,32], index: 0, kind: input, shape index: {}]   ;;  %s214_s1 = inlined_call_operand.vmem [shape: f32[64,32], index: 1, kind: input, shape index: {}]   ;;  %s215_s2 = inlined_call_operand.hbm [shape: f32[16,64], index: 2, kind: output, shape index: {}]  }
   0x1   :  { %v21_v0 = vld [vmem:[%s214_s1 + $0x38] sm:$0xff]  ;;  %v20_v1 = vld [vmem:[%s214_s1 + $0x30] sm:$0xff] }
   0x2   :  { %97 = vmatpush.xpose.msk.msra.mxu0 %vm22_vm0, %v21_v0  ;;  %107 = vmatpush.xpose.msk.msra.mxu1 %vm22_vm0, %v21_v0 }
   0x3   :  { %7 = vsyncpa [#allocation3], 0  ;;  %v19_v2 = vld [vmem:[%s214_s1 + $0x28] sm:$0xff]  ;;  %v18_v3 = vld [vmem:[%s214_s1 + $0x20] sm:$0xff]  ;;  %s144_s29 = smov [#allocation2]   ;;  %s85_s4 = sshll.u32 %s215_s2, 4  ;;  %s86_s4 = int_to_ptr.hbm [resolvable:$true] %s85_s4 }
   0x4   :  { %v17_v4 = vld [vmem:[%s214_s1 + $0x18] sm:$0xff]  ;;  %v16_v5 = vld [vmem:[%s214_s1 + $0x10] sm:$0xff]  ;;  %v15_v6 = vld [vmem:[%s214_s1 + $0x8] sm:$0xff]  ;;  %s83_s30 = sshll.u32 %s144_s29, 4  ;;  %vm76_vm1 = vcmask 523264   ;;  %s145_s5 = smov 128   ;;  %s84_s30 = int_to_ptr.vmem [resolvable:$true] %s83_s30 }
   0x5   :  { %v14_v7 = vld [vmem:[%s214_s1] sm:$0xff]  ;;  %v13_v9 = vld [vmem:[%s213_s0 + $0x8] sm:$0xff]  ;;  %s146_s6 = smov 8  }
   0x6   :  { %98 = vmatpush.xpose.msk.msra.mxu0 %vm22_vm0, %v20_v1  ;;  %108 = vmatpush.xpose.msk.msra.mxu1 %vm22_vm0, %v20_v1  ;;  %v12_v8 = vld [vmem:[%s213_s0] sm:$0xff] }
   0xa   :  { %99 = vmatpush.xpose.msk.msra.mxu0 %vm22_vm0, %v19_v2  ;;  %109 = vmatpush.xpose.msk.msra.mxu1 %vm22_vm0, %v19_v2 }
   0xe   :  { %100 = vmatpush.xpose.msk.msra.mxu0 %vm22_vm0, %v18_v3  ;;  %110 = vmatpush.xpose.msk.msra.mxu1 %vm22_vm0, %v18_v3 }
  0x12   :  { %101 = vmatpush.xpose.msk.msra.mxu0 %vm22_vm0, %v17_v4  ;;  %111 = vmatpush.xpose.msk.msra.mxu1 %vm22_vm0, %v17_v4 }
  0x16   :  { %102 = vmatpush.xpose.msk.msra.mxu0 %vm22_vm0, %v16_v5  ;;  %112 = vmatpush.xpose.msk.msra.mxu1 %vm22_vm0, %v16_v5 }
  0x1a   :  { %103 = vmatpush.xpose.msk.msra.mxu0 %vm22_vm0, %v15_v6  ;;  %113 = vmatpush.xpose.msk.msra.mxu1 %vm22_vm0, %v15_v6 }
  0x1e   :  { %104 = vmatpush.xpose.msk.msra.mxu0 %vm22_vm0, %v14_v7  ;;  %114 = vmatpush.xpose.msk.msra.mxu1 %vm22_vm0, %v14_v7 }
  0x21   :  { %105 = vmatmul.msk.f32.vlgmr.msra.gmra.mxu0 %vm22_vm0, %v12_v8  ;;  %106 = vmatmul.msk.f32.vlgmr.msra.gmra.mxu1 %vm22_vm0, %v13_v9 }
  0x9e   :  { %v70_v10 = vpop.f32.mrf.mxu0  ;;  %v73_v11 = vpop.f32.mrf.mxu1 }
  0x9f   :  { %77 = vst.msk [vmem:[#allocation2] sm:$0xff] %vm76_vm1, %v70_v10 }
  0xa0   :  { %78 = vst.msk [vmem:[#allocation2 + $0x8] sm:$0xff] %vm76_vm1, %v73_v11 }
  0xa1   :  { %91 = dma.vmem_to_hbm [thread:$0]  %s84_s30, 256, %s86_s4, [#allocation3], %s145_s5, %s145_s5, %s146_s6  }
  0xa2   :  { %142 = dma.done.wait [#allocation3], 256  }
  0xa3   :  { %143 = vsyncadd [#allocation3], 4294967040 }
  0xa4   :  { %96 = vsyncpa [#allocation3], 1 }

</bundles_post_ra>
